<compile_context>
chip_gen: v6e
topology: v6e:2x2x1
jax: 0.10.0
libtpu: 0.0.40
codegen_flags: <defaults>
</compile_context>

<pallas_src>
import functools

import jax
import jax.numpy as jnp
from jax import lax
from jax.experimental import pallas as pl
from jax.experimental.pallas import tpu as pltpu


def _focal_loss_kernel(logit_ref, target_ref, alpha_ref, out_ref, acc_ref,
                       *, gamma, eps, hw_valid, tile_hw):
    j = pl.program_id(1)

    @pl.when(j == 0)
    def _():
        acc_ref[...] = jnp.zeros_like(acc_ref)

    probs = logit_ref[...].astype(jnp.float32)       # (C, tile_hw)
    tgt = target_ref[...]                            # (1, tile_hw) int32
    alpha = alpha_ref[...].astype(jnp.float32)       # (C, 1)

    # One-hot gather along the class (sublane) axis.
    class_ids = lax.broadcasted_iota(jnp.int32, probs.shape, 0)      # (C, tile_hw)
    onehot = (class_ids == tgt).astype(jnp.float32)                  # (C, tile_hw)

    pt = jnp.sum(probs * onehot, axis=0, keepdims=True) + eps        # (1, tile_hw)
    alpha_class = jnp.sum(alpha * onehot, axis=0, keepdims=True)     # (1, tile_hw)

    # Neutralize the OOB tail of the last tile before the log so garbage data
    # cannot become NaN/Inf: pt -> 1 (log = 0, focal weight = 0), alpha -> 0.
    col_ids = lax.broadcasted_iota(jnp.int32, pt.shape, 1) + j * tile_hw
    valid = col_ids < hw_valid
    pt = jnp.where(valid, pt, 1.0)
    alpha_class = jnp.where(valid, alpha_class, 0.0)

    logpt = jnp.log(pt)
    focal_w = (1.0 - pt) ** gamma    # gamma is a python int -> exact integer_pow
    acc_ref[...] += -focal_w * alpha_class * logpt   # elementwise VPU accumulate

    # Single cross-lane reduction per image, off the steady-state path.
    @pl.when(j == pl.num_programs(1) - 1)
    def _():
        total = jnp.sum(acc_ref[...])
        lane = lax.broadcasted_iota(jnp.int32, out_ref.shape, 1)
        out_ref[...] = jnp.where(lane == 0, total, 0.0)


def _pick_tile_hw(hw, c, itemsize, max_tile_bytes=2 << 20):
    """Largest lane-aligned pixel tile whose logits slab stays under max_tile_bytes."""
    if hw % 128 != 0:
        # TODO(synk): spatial sizes that are not a multiple of 128 fall back to a
        # single full-width block per image.
        return hw
    cap = max(128, ((max_tile_bytes // max(1, c * itemsize)) // 128) * 128)
    return min(hw, cap)


def focal_loss_ori(logit, target, alpha, *, gamma=2, eps=1e-6,
                   size_average=True, tile_hw=None):
    """logit: (N, C, H, W) probabilities (f32 or bf16); target: (N, H, W) int;
    alpha: (C,) per-class weights. Returns scalar f32 loss."""
    N, C, H, W = logit.shape
    HW = H * W
    M = N * HW

    # Free contiguous reshapes only -- no transpose, no pad, no extra HBM pass.
    logit3d = logit.reshape(N, C, HW)
    target3d = target.reshape(N, 1, HW).astype(jnp.int32)
    alpha2d = jnp.asarray(alpha, jnp.float32).reshape(C, 1)

    if tile_hw is None:
        tile_hw = _pick_tile_hw(HW, C, jnp.dtype(logit.dtype).itemsize)
    num_j = pl.cdiv(HW, tile_hw)

    kernel = functools.partial(_focal_loss_kernel, gamma=gamma, eps=eps,
                               hw_valid=HW, tile_hw=tile_hw)

    partial = pl.pallas_call(
        kernel,
        out_shape=jax.ShapeDtypeStruct((N, 1, 128), jnp.float32),
        grid_spec=pltpu.PrefetchScalarGridSpec(
            num_scalar_prefetch=0,
            grid=(N, num_j),
            in_specs=[
                pl.BlockSpec((None, C, tile_hw), lambda n, j: (n, 0, j)),  # logits
                pl.BlockSpec((None, 1, tile_hw), lambda n, j: (n, 0, j)),  # target
                pl.BlockSpec((C, 1), lambda n, j: (0, 0)),                 # alpha
            ],
            out_specs=pl.BlockSpec((None, 1, 128), lambda n, j: (n, 0, 0)),
            scratch_shapes=[pltpu.VMEM((1, tile_hw), jnp.float32)],
        ),
        compiler_params=pltpu.CompilerParams(
            dimension_semantics=("parallel", "arbitrary"),
            vmem_limit_bytes=32 * 1024 * 1024),
    )(logit3d, target3d, alpha2d)

    total = jnp.sum(partial)
    if size_average:
        return total / jnp.float32(M)
    return total


def focal_loss_ref(logit, target, alpha, *, gamma=2, eps=1e-6, size_average=True):
    """Pure-JAX reference mirroring the PyTorch forward."""
    N, C = logit.shape[0], logit.shape[1]
    logit2d = jnp.transpose(logit.reshape(N, C, -1), (0, 2, 1)).reshape(-1, C)
    tgt = target.reshape(-1).astype(jnp.int32)
    pt = jnp.take_along_axis(logit2d, tgt[:, None], axis=1)[:, 0] + eps
    logpt = jnp.log(pt)
    alpha_class = jnp.asarray(alpha, jnp.float32)[tgt]
    loss = -((1.0 - pt) ** gamma) * alpha_class * logpt
    return jnp.mean(loss) if size_average else jnp.sum(loss)


if __name__ == "__main__":
    num_class = 2
    alpha = jnp.array([0.25, 0.75], jnp.float32)   # default alpha from the module

    key = jax.random.PRNGKey(0)
    k1, k2 = jax.random.split(key)
    N, C, H, W = 2, num_class, 16, 16
    raw = jax.random.normal(k1, (N, C, H, W), jnp.float32)
    # The PyTorch module gathers probabilities directly, so feed softmax probs.
    probs = jax.nn.softmax(raw, axis=1)
    target = jax.random.randint(k2, (N, H, W), 0, num_class, jnp.int32)

    loss = focal_loss_ori(probs, target, alpha, gamma=2, size_average=True)
    loss = jax.block_until_ready(loss)

    ref = focal_loss_ref(probs, target, alpha, gamma=2, size_average=True)
    assert jnp.allclose(loss, ref, rtol=1e-5, atol=1e-6), (loss, ref)
    print("KERNEL_OK")
</pallas_src>

<mosaic_0001>
module attributes {stable_mosaic.version = 11 : i64} {
  func.func @_focal_loss_kernel(%arg0: i32, %arg1: i32, %arg2: memref<1x2x256xf32, #tpu.memory_space<vmem>>, %arg3: memref<1x1x256xi32, #tpu.memory_space<vmem>>, %arg4: memref<2x1xf32, #tpu.memory_space<vmem>>, %arg5: memref<1x1x128xf32, #tpu.memory_space<vmem>>, %arg6: memref<1x256xf32, #tpu.memory_space<vmem>>) attributes {dimension_semantics = [#tpu.dimension_semantics<parallel>, #tpu.dimension_semantics<arbitrary>], iteration_bounds = array<i64: 2, 1>, scalar_prefetch = 0 : i64, scratch_operands = 1 : i64, tpu.core_type = #tpu.core_type<tc>, window_params = [{transform_indices = @transform_0, window_bounds = array<i64: 1, 2, 256>}, {transform_indices = @transform_1, window_bounds = array<i64: 1, 1, 256>}, {pipeline_mode = #tpu.pipeline_mode<synchronous>, transform_indices = @transform_2, window_bounds = array<i64: 2, 1>}, {transform_indices = @transform_3, window_bounds = array<i64: 1, 1, 128>}]} {
    %c0_i32 = arith.constant 0 : i32
    %0 = arith.cmpi eq, %arg1, %c0_i32 : i32
    %1 = arith.extui %0 : i1 to i32
    %c0_i32_0 = arith.constant 0 : i32
    %2 = arith.cmpi ne, %1, %c0_i32_0 : i32
    scf.if %2 {
      %cst_21 = arith.constant 0.000000e+00 : f32
      %46 = vector.broadcast %cst_21 : f32 to vector<1x256xf32>
      %c0_22 = arith.constant 0 : index
      %c0_23 = arith.constant 0 : index
      %47 = vector.load %arg6[%c0_22, %c0_23] : memref<1x256xf32, #tpu.memory_space<vmem>>, vector<1x256xf32>
      tpu.vector_store %arg6[%c0_22, %c0_23], %46 {strides = array<i32>} : memref<1x256xf32, #tpu.memory_space<vmem>>, vector<1x256xf32>,
    } else {
    }
    %c0 = arith.constant 0 : index
    %c0_1 = arith.constant 0 : index
    %c0_2 = arith.constant 0 : index
    %3 = vector.load %arg2[%c0, %c0_1, %c0_2] : memref<1x2x256xf32, #tpu.memory_space<vmem>>, vector<1x2x256xf32>
    %4 = vector.shape_cast %3 : vector<1x2x256xf32> to vector<2x256xf32>
    %c0_3 = arith.constant 0 : index
    %c0_4 = arith.constant 0 : index
    %c0_5 = arith.constant 0 : index
    %5 = vector.load %arg3[%c0_3, %c0_4, %c0_5] : memref<1x1x256xi32, #tpu.memory_space<vmem>>, vector<1x1x256xi32>
    %6 = vector.shape_cast %5 : vector<1x1x256xi32> to vector<1x256xi32>
    %c0_6 = arith.constant 0 : index
    %c0_7 = arith.constant 0 : index
    %7 = vector.load %arg4[%c0_6, %c0_7] : memref<2x1xf32, #tpu.memory_space<vmem>>, vector<2x1xf32>
    %8 = tpu.iota {dimensions = array<i32: 0>} : vector<2x256xi32>
    %9 = vector.broadcast %6 : vector<1x256xi32> to vector<2x256xi32>
    %10 = arith.cmpi eq, %8, %9 : vector<2x256xi32>
    %11 = arith.extui %10 : vector<2x256xi1> to vector<2x256xi32>
    %12 = arith.sitofp %11 : vector<2x256xi32> to vector<2x256xf32>
    %13 = arith.mulf %4, %12 : vector<2x256xf32>
    %cst = arith.constant dense<0.000000e+00> : vector<256xf32>
    %14 = vector.multi_reduction <add>, %13, %cst [0] : vector<2x256xf32> to vector<256xf32>
    %15 = vector.shape_cast %14 : vector<256xf32> to vector<1x256xf32>
    %cst_8 = arith.constant 9.99999997E-7 : f32
    %16 = vector.broadcast %cst_8 : f32 to vector<1x256xf32>
    %17 = arith.addf %15, %16 : vector<1x256xf32>
    %18 = vector.broadcast %7 : vector<2x1xf32> to vector<2x256xf32>
    %19 = arith.mulf %18, %12 : vector<2x256xf32>
    %cst_9 = arith.constant dense<0.000000e+00> : vector<256xf32>
    %20 = vector.multi_reduction <add>, %19, %cst_9 [0] : vector<2x256xf32> to vector<256xf32>
    %21 = vector.shape_cast %20 : vector<256xf32> to vector<1x256xf32>
    %22 = tpu.iota {dimensions = array<i32: 1>} : vector<1x256xi32>
    %c256_i32 = arith.constant 256 : i32
    %23 = arith.muli %arg1, %c256_i32 : i32
    %24 = vector.broadcast %23 : i32 to vector<1x256xi32>
    %25 = arith.addi %22, %24 : vector<1x256xi32>
    %c256_i32_10 = arith.constant 256 : i32
    %26 = vector.broadcast %c256_i32_10 : i32 to vector<1x256xi32>
    %27 = arith.cmpi slt, %25, %26 : vector<1x256xi32>
    %cst_11 = arith.constant 1.000000e+00 : f32
    %28 = vector.broadcast %cst_11 : f32 to vector<1x256xf32>
    %29 = arith.select %27, %17, %28 : vector<1x256xi1>, vector<1x256xf32>
    %cst_12 = arith.constant 0.000000e+00 : f32
    %30 = vector.broadcast %cst_12 : f32 to vector<1x256xf32>
    %31 = arith.select %27, %21, %30 : vector<1x256xi1>, vector<1x256xf32>
    %32 = math.log %29 : vector<1x256xf32>
    %cst_13 = arith.constant 1.000000e+00 : f32
    %33 = vector.broadcast %cst_13 : f32 to vector<1x256xf32>
    %34 = arith.subf %33, %29 : vector<1x256xf32>
    %35 = arith.mulf %34, %34 : vector<1x256xf32>
    %c0_14 = arith.constant 0 : index
    %c0_15 = arith.constant 0 : index
    %36 = vector.load %arg6[%c0_14, %c0_15] : memref<1x256xf32, #tpu.memory_space<vmem>>, vector<1x256xf32>
    %cst_16 = arith.constant 0.000000e+00 : f32
    %37 = vector.broadcast %cst_16 : f32 to vector<1x256xf32>
    %38 = arith.subf %37, %35 : vector<1x256xf32>
    %39 = arith.mulf %38, %31 : vector<1x256xf32>
    %40 = arith.mulf %39, %32 : vector<1x256xf32>
    %41 = arith.addf %36, %40 : vector<1x256xf32>
    %c0_17 = arith.constant 0 : index
    %c0_18 = arith.constant 0 : index
    %42 = vector.load %arg6[%c0_17, %c0_18] : memref<1x256xf32, #tpu.memory_space<vmem>>, vector<1x256xf32>
    tpu.vector_store %arg6[%c0_17, %c0_18], %41 {strides = array<i32>} : memref<1x256xf32, #tpu.memory_space<vmem>>, vector<1x256xf32>,
    %c0_i32_19 = arith.constant 0 : i32
    %43 = arith.cmpi eq, %arg1, %c0_i32_19 : i32
    %44 = arith.extui %43 : i1 to i32
    %c0_i32_20 = arith.constant 0 : i32
    %45 = arith.cmpi ne, %44, %c0_i32_20 : i32
    scf.if %45 {
      %c0_21 = arith.constant 0 : index
      %c0_22 = arith.constant 0 : index
      %46 = vector.load %arg6[%c0_21, %c0_22] : memref<1x256xf32, #tpu.memory_space<vmem>>, vector<1x256xf32>
      %47 = vector.shape_cast %46 : vector<1x256xf32> to vector<1x1x256xf32>
      %cst_23 = arith.constant dense<0.000000e+00> : vector<1xf32>
      %48 = vector.multi_reduction <add>, %47, %cst_23 [1, 2] : vector<1x1x256xf32> to vector<1xf32>
      %49 = vector.shape_cast %48 : vector<1xf32> to vector<1x1x1xf32>
      %50 = vector.extract %49[0, 0, 0] : f32 from vector<1x1x1xf32>
      %51 = tpu.iota {dimensions = array<i32: 1>} : vector<1x128xi32>
      %c0_i32_24 = arith.constant 0 : i32
      %52 = vector.broadcast %c0_i32_24 : i32 to vector<1x128xi32>
      %53 = arith.cmpi eq, %51, %52 : vector<1x128xi32>
      %cst_25 = arith.constant 0.000000e+00 : f32
      %54 = vector.broadcast %50 : f32 to vector<1x128xf32>
      %55 = vector.broadcast %cst_25 : f32 to vector<1x128xf32>
      %56 = arith.select %53, %54, %55 : vector<1x128xi1>, vector<1x128xf32>
      %c0_26 = arith.constant 0 : index
      %c0_27 = arith.constant 0 : index
      %c0_28 = arith.constant 0 : index
      %57 = vector.load %arg5[%c0_26, %c0_27, %c0_28] : memref<1x1x128xf32, #tpu.memory_space<vmem>>, vector<1x1x128xf32>
      %58 = vector.shape_cast %57 : vector<1x1x128xf32> to vector<1x128xf32>
      %59 = vector.shape_cast %56 : vector<1x128xf32> to vector<1x1x128xf32>
      tpu.vector_store %arg5[%c0_26, %c0_27, %c0_28], %59 {strides = array<i32>} : memref<1x1x128xf32, #tpu.memory_space<vmem>>, vector<1x1x128xf32>,
    } else {
    }
    return
  }
  func.func @transform_0(%arg0: i32, %arg1: i32) -> (i32, i32, i32) {
    %c0_i32 = arith.constant 0 : i32
    %c0_i32_0 = arith.constant 0 : i32
    return %arg0, %c0_i32, %arg1 : i32, i32, i32
  }
  func.func @transform_1(%arg0: i32, %arg1: i32) -> (i32, i32, i32) {
    %c0_i32 = arith.constant 0 : i32
    %c0_i32_0 = arith.constant 0 : i32
    return %arg0, %c0_i32, %arg1 : i32, i32, i32
  }
  func.func @transform_2(%arg0: i32, %arg1: i32) -> (i32, i32) {
    %c0_i32 = arith.constant 0 : i32
    %c0_i32_0 = arith.constant 0 : i32
    %c0_i32_1 = arith.constant 0 : i32
    return %c0_i32, %c0_i32_0 : i32, i32
  }
  func.func @transform_3(%arg0: i32, %arg1: i32) -> (i32, i32, i32) {
    %c0_i32 = arith.constant 0 : i32
    %c0_i32_0 = arith.constant 0 : i32
    %c0_i32_1 = arith.constant 0 : i32
    return %arg0, %c0_i32, %c0_i32_0 : i32, i32, i32
  }
}

</mosaic_0001>

<bundles_post_ra>
// kernel: tpu_custom_call.1
= control target key start
LH: loop header
LB: loop body
LE: loop exit
PB: predicated region body
PF: predicated region fallthrough
CT: control target
= control target key end

     0   :  { %8 = vsyncpa [#allocation4], 0  ;;  %s922_s0 = inlined_call_operand.hbm [shape: f32[2,2,256], index: 0, kind: input, shape index: {}]   ;;  %s923_s1 = inlined_call_operand.vmem [shape: s32[2,1,256], index: 1, kind: input, shape index: {}]   ;;  %s924_s2 = inlined_call_operand.vmem [shape: f32[2,1], index: 2, kind: input, shape index: {}]   ;;  %s925_s3 = inlined_call_operand.hbm [shape: f32[2,1,128], index: 3, kind: output, shape index: {}]  }
   0x1   :  { %10 = vsyncpa [#allocation4 + $0x1], 0 }
   0x2   :  { %11 = vsyncpa [#allocation5], 0 }
   0x3   :  { %13 = vsyncpa [#allocation5 + $0x1], 0  ;;  %s739_s12 = smov 0   ;;  %s741_s13 = smov 0  }
   0x4   :  { %s743_s14 = smov 0   ;;  %s745_s15 = smov 0  }
   0x5   :  { %s747_s16 = smov 0   ;;  %s749_s17 = smov 0  }
   0x6 LB: > { %s514_s18 = sadd.s32 4294967295, %s711_s17   ;;  %s515_s19 = sadd.s32 4294967294, %s711_s17   ;;  %s711_s17 = sphi %s749_s17, %s19_s17   ;;  %s707_s16 = sphi %s747_s16, %s939_s16   ;;  %s703_s15 = sphi %s745_s15, %s938_s15   ;;  %s699_s14 = sphi %s743_s14, %s937_s14   ;;  %s695_s13 = sphi %s741_s13, %s936_s13   ;;  %s691_s12 = sphi %s739_s12, %s935_s12  }
   0x7   : > { %s31_s20 = sadd.s32 1, %s707_s16  ;;  %s40_s21 = sadd.s32 1, %s699_s14 }
   0x8   : > { %p33_p0 = scmp.ge.s32.totalorder %s31_s20, 2  ;;  %p47_p1 = scmp.ne.s32.totalorder %s699_s14, %s695_s13 }
   0x9   : > { %p48_p2 = scmp.eq.s32.totalorder %s711_s17, 0  ;;  %p53_p3 = scmp.ne.s32.totalorder %s695_s13, %s691_s12 }
   0xa   : > { %s941_s20 = smov (%p33_p0, %s31_s20), 0  ;;  %p54_p5 = scmp.eq.s32.totalorder %s514_s18, 0 }
   0xb   : > { %p780_p4 = por %p48_p2, %p47_p1  ;;  %s35_s23 = ssub.s32 %s707_s16, %s941_s20 }
   0xc   : > { %p126_p6 = scmp.eq.s32.totalorder %s514_s18, 1  ;;  %p38_p7 = scmp.eq.s32.totalorder %s35_s23, 0 }
   0xd   : > { %p786_p8 = por %p54_p5, %p53_p3  ;;  %p132_p10 = scmp.eq.s32.totalorder %s515_s19, 1 }
   0xe   : > { %p790_p9 = por %p126_p6, %p47_p1  ;;  %p544_p13 = scmp.lt.s32.totalorder %s711_s17, 2 }
   0xf   : > { %s795_s26 = scalar_select %p38_p7, %s699_s14, %s40_s21  }
  0x10   : > { %p797_p11 = por %p132_p10, %p53_p3  ;;  %s155_s28 = sand.u32 1, %s699_s14  }
  0x11   : > { %s518_s29 = sshll.u32 %s155_s28, 2  ;;  %s529_s30 = sshll.u32 %s707_s16, 6 }
  0x12   : > { %s929_s27 = scalar_select %p797_p11, 1, 0 }
  0x13   : > { %s167_s6 = scalar_lea.hbm %s922_s0, %s529_s30  ;;  %s159_s7 = scalar_lea.vmem [#allocation3], %s518_s29 }
  0x14   : > { %s169_s8 = sshll.u32 %s159_s7, 4  ;;  %p810_p0 = pnand %p544_p13, %p780_p4  ;;  %s170_s8 = int_to_ptr.vmem [resolvable:$true] %s169_s8 }
  0x15   : > { %p521_p1 = scmp.ge.s32.totalorder %s711_s17, 1  ;;  %p186_p2 = scmp.lt.s32.totalorder %s711_s17, 3 }
  0x16   : > { %s156_s10 = scalar_lea.sflag [#allocation4], %s155_s28  ;;  %p605_p3 = pneg %p810_p0 }
  0x17   : > { %s616_s11 = scalar_lea.vmem %s170_s8, 64  ;;  %s713_s18 = smov [#allocation3]  }
  0x18   : > { %p617_p5 = scmp.ne.s32.totalorder %s170_s8, %s616_s11  ;;  %s621_s19 = sshll.u32 %s713_s18, 4  ;;  %s622_s19 = int_to_ptr.vmem [resolvable:$false] %s621_s19 }
  0x19   : > { %s623_s21 = scalar_lea.vmem %s622_s19, 128  ;;  %p624_p10 = scmp.lt.s32.totalorder %s170_s8, %s622_s19 }
  0x1a   : > { %p619_p6 = pnand %p617_p5, %p605_p3  ;;  %p625_p12 = scmp.lt.s32.totalorder %s623_s21, %s616_s11 }
  0x1c   : > { %p620_p7 = pneg %p619_p6  ;;  %p626_p4 = por %p625_p12, %p624_p10 }
  0x1e   : > { %p627_p13 = pnand %p626_p4, %p620_p7 }
  0x20   : > { %630 = shalt.err (!%p627_p13)
}
  0x21   : > { %539 = dma.hbm_to_vmem [thread:$0]  (!%p810_p0), %s167_s6, 64, %s170_s8, %s156_s10  }
  0x22   : > { %p187_p11 = pnand %p521_p1, %p186_p2 }
  0x23   : > { %s825_s22 = sand.u32 (!%p187_p11), 1, %s695_s13  }
  0x24   : > { %190 = sbr.rel (%p187_p11) target bundleno = 423 (0x1a7), region = 32  ;;  %s522_s23 = sshll.u32 (!%p187_p11), %s825_s22, 2 }
  0x25   : > { %s193_s28 = scalar_lea.sflag (!%p187_p11), [#allocation4], %s825_s22  ;;  %s829_s29 = scalar_lea.vmem (!%p187_p11), [#allocation3], %s522_s23 }
  0x29   : > { %682 = dma.done.wait (%p786_p8), %s193_s28, 64  }
  0x2a   : > { %684 = vsyncadd (%p786_p8), %s193_s28, 4294967232  ;;  %v240_v0 = vlaneseq  ;;  %v714_v1 = vmov 0   ;;  %v715_v3 = vmov 0.0   ;;  %v247_v4 = vld [vmem:[%s924_s2] sm:$0x3]  ;;  %p228_p8 = scmp.lt.s32.totalorder %s703_s15, 1 }
  0x2b   : > { %598 = vset.pattern.permute.xlu0 %v714_v1  ;;  %v716_v11 = vmov 1983009808   ;;  %v245_v19 = vld [vmem:[%s829_s29] sm:$0xf]  ;;  %vm287_vm3 = vcmask 1041408   ;;  %vm392_vm4 = vcmask 1040384  }
  0x2c   : > { %vm836_vm0 = vcmp.lt.s32.totalorder %v240_v0, 256  ;;  %306 = vperm.xlu0 %598, %v247_v4   ;;  %s229_s24 = scalar_select %p228_p8, %s703_s15, 1  ;;  %v848_v5 = vshrl.u32 %v240_v0, 7  ;;  %v268_v12 = vunpack.c.l.s4 %v716_v11  ;;  %v717_v54 = vmov 1966171168  }
  0x2d   : > { %244 = vst.msk [vmem:[#allocation2] sm:$0x3] %vm836_vm0, %v715_v3  ;;  %v357_v55 = vunpack.c.l.s4 %v717_v54  ;;  %s526_s9 = sshll.u32 %s703_s15, 4  ;;  %s225_s10 = scalar_lea.vmem [#allocation6], %s825_s22 }
  0x2e   : > { %s523_s5 = sshll.u32 %s229_s24, 1  ;;  %v252_v6 = vsub.s32 0, %v848_v5  ;;  %v256_v7 = vsub.s32 1, %v848_v5  ;;  %v269_v13 = vunpack.c.0.s8 %v268_v12  ;;  %s422_s11 = sshll.u32 %s225_s10, 4  ;;  %s423_s11 = int_to_ptr.vmem [resolvable:$true] %s422_s11 }
  0x2f   : > { %s234_s8 = scalar_lea.vmem %s923_s1, %s523_s5  ;;  %v358_v1 = vunpack.c.0.s8 %v357_v55  ;;  %s880_s23 = scalar_lea.hbm %s925_s3, %s526_s9 }
  0x30   : > { %v246_v8 = vld [vmem:[%s234_s8] sm:$0x3]  ;;  %v272_v16 = vsub.s32 %v269_v13, %v848_v5  ;;  %s410_s28 = scalar_lea.sflag [#allocation5], %s825_s22  ;;  %s631_s29 = scalar_lea.vmem %s423_s11, 16 }
  0x31   : > { %v253_v9 = vrot.slane %v246_v8, %v252_v6  ;;  %v257_v10 = vrot.slane %v246_v8, %v256_v7  ;;  %v361_v12 = vsub.s32 %v358_v1, %v848_v5  ;;  %p632_p11 = scmp.ne.s32.totalorder %s423_s11, %s631_s29  ;;  %s718_s15 = smov [#allocation6]  }
  0x32   : > { %s635_s30 = sshll.u32 %s718_s15, 4  ;;  %s636_s30 = int_to_ptr.vmem [resolvable:$false] %s635_s30 }
  0x33   : > { %vm258_vm1 = vcmp.eq.s32.totalorder %v848_v5, %v253_v9  ;;  %vm259_vm2 = vcmp.eq.s32.totalorder %v848_v5, %v257_v10  ;;  %p633_p12 = pnand %p632_p11, %p790_p9  ;;  %s637_s4 = scalar_lea.vmem %s636_s30, 32 }
  0x34   : > { %v524_v14 = vsel %vm258_vm1, 1.0, %v715_v3  ;;  %v525_v15 = vsel %vm259_vm2, 1.0, %v715_v3  ;;  %p638_p1 = scmp.lt.s32.totalorder %s423_s11, %s636_s30  ;;  %p639_p2 = scmp.lt.s32.totalorder %s637_s4, %s631_s29 }
  0x35   : > { %v266_v17 = vcombine.low %v524_v14, %v525_v15  ;;  %p634_p0 = pneg %p633_p12 }
  0x36   : > { %p640_p3 = por %p639_p2, %p638_p1 }
  0x37   : > { %v273_v18 = vrot.slane %v266_v17, %v272_v16  ;;  %v346_v17 = vld [vmem:[#allocation2] sm:$0x3] }
  0x38   : > { %p641_p5 = pnand %p640_p3, %p634_p0 }
  0x39   : > { %v275_v20 = vmul.f32 %v273_v18, %v245_v19 }
  0x3b   : > { %v283_v21 = vrot.slane %v275_v20, %v272_v16 }
  0x3d   : > { %v284_v22 = vcombine.high %v283_v21, %v283_v21  ;;  %v288_v23 = vsel %vm287_vm3, %v283_v21, 0.0 }
  0x3e   : > { %v289_v25 = vrot.slane %v288_v23, 4 }
  0x3f   : > { %v295_v24 = vsel %vm287_vm3, %v284_v22, 0.0 }
  0x40   : > { %v296_v26 = vrot.slane %v295_v24, 4  ;;  %v290_v27 = vadd.f32 %v289_v25, %v288_v23 }
  0x42   : > { %v297_v28 = vadd.f32 %v296_v26, %v295_v24  ;;  %v291_v29 = vrot.slane %v290_v27, 2 }
  0x44   : > { %v298_v30 = vrot.slane %v297_v28, 2  ;;  %v292_v31 = vadd.f32 %v291_v29, %v290_v27 }
  0x46   : > { %v299_v32 = vadd.f32 %v298_v30, %v297_v28  ;;  %v293_v33 = vrot.slane %v292_v31, 1 }
  0x48   : > { %v300_v34 = vrot.slane %v299_v32, 1  ;;  %v294_v35 = vadd.f32 %v293_v33, %v292_v31 }
  0x4a   : > { %v301_v36 = vadd.f32 %v300_v34, %v299_v32  ;;  %v302_v37 = vadd.f32 1e-06, %v294_v35 }
  0x4c   : > { %v303_v38 = vadd.f32 1e-06, %v301_v36  ;;  %599 = vlog2.f32 %v302_v37  ;;  %v342_v46 = vsub.f32 1.0, %v302_v37 }
  0x4e   : > { %601 = vlog2.f32 %v303_v38  ;;  %v343_v47 = vsub.f32 1.0, %v303_v38  ;;  %v344_v52 = vmul.f32 %v342_v46, %v342_v46 }
  0x50   : > { %v345_v53 = vmul.f32 %v343_v47, %v343_v47  ;;  %v347_v62 = vsub.f32 0.0, %v344_v52 }
  0x52   : > { %v348_v63 = vsub.f32 0.0, %v345_v53 }
  0x59   : > { %v600_v56 = vpop.eup %599 }
  0x5a   : > { %v339_v8 = vmul.f32 0.6931472, %v600_v56 }
  0x5b   : > { %v602_v59 = vpop.eup %601 }
  0x5c   : > { %v341_v9 = vmul.f32 0.6931472, %v602_v59 }
  0xa7   : > { %v307_v39 = vpop.permute.xlu0 %306 }
  0xa8   : > { %v309_v40 = vmul.f32 %v524_v14, %v307_v39  ;;  %v310_v41 = vmul.f32 %v525_v15, %v307_v39 }
  0xaa   : > { %v311_v42 = vsel %vm287_vm3, %v309_v40, 0.0  ;;  %v318_v43 = vsel %vm287_vm3, %v310_v41, 0.0 }
  0xab   : > { %v312_v44 = vrot.slane %v311_v42, 4  ;;  %v319_v45 = vrot.slane %v318_v43, 4 }
  0xad   : > { %v313_v48 = vadd.f32 %v312_v44, %v311_v42  ;;  %v320_v49 = vadd.f32 %v319_v45, %v318_v43 }
  0xaf   : > { %v314_v50 = vrot.slane %v313_v48, 2  ;;  %v321_v51 = vrot.slane %v320_v49, 2 }
  0xb1   : > { %v315_v57 = vadd.f32 %v314_v50, %v313_v48  ;;  %v322_v58 = vadd.f32 %v321_v51, %v320_v49 }
  0xb3   : > { %v316_v60 = vrot.slane %v315_v57, 1  ;;  %v323_v61 = vrot.slane %v322_v58, 1 }
  0xb5   : > { %v317_v3 = vadd.f32 %v316_v60, %v315_v57  ;;  %v324_v4 = vadd.f32 %v323_v61, %v322_v58 }
  0xb7   : > { %v349_v10 = vmul.f32 %v347_v62, %v317_v3  ;;  %v350_v11 = vmul.f32 %v348_v63, %v324_v4 }
  0xb9   : > { %v351_v13 = vmul.f32 %v349_v10, %v339_v8  ;;  %v352_v14 = vmul.f32 %v350_v11, %v341_v9 }
  0xbb   : > { %v355_v15 = vcombine.low %v351_v13, %v352_v14 }
  0xbd   : > { %v362_v16 = vrot.slane %v355_v15, %v361_v12 }
  0xbf   : > { %v369_v18 = vrot.slane %v362_v16, %v361_v12 }
  0xc1   : > { %v371_v19 = vadd.f32 %v369_v18, %v346_v17 }
  0xc3   : > { %376 = vst.msk [vmem:[#allocation2] sm:$0x3] %vm836_vm0, %v371_v19 }
  0xca   : > { %v380_v20 = vld [vmem:[#allocation2] sm:$0x3] }
  0xcb   : > { %v385_v21 = vrot.slane %v380_v20, %v252_v6  ;;  %v389_v22 = vrot.slane %v380_v20, %v256_v7  ;;  %v326_v6 = vand.u32 127, %v240_v0 }
  0xcd   : > { %v393_v23 = vsel %vm392_vm4, %v385_v21, 0.0  ;;  %v394_v24 = vsel %vm392_vm4, %v389_v22, 0.0  ;;  %vm405_vm5 = vcmp.eq.s32.totalorder %v326_v6, 0 }
  0xce   : > { %v395_v25 = vadd.f32 %v394_v24, %v393_v23 }
  0xd0   : > { %396 = vadd.xlane.f32.xlu0 %v395_v25 }
 0x159   : > { %v397_v26 = vpop.xlane.xlu0 %396 }
 0x15a   : > { %v398_v27 = vrot.slane %v397_v26, 4 }
 0x15c   : > { %v399_v28 = vadd.f32 %v398_v27, %v397_v26 }
 0x15e   : > { %v400_v29 = vrot.slane %v399_v28, 2 }
 0x160   : > { %v401_v2 = vadd.f32 %v400_v29, %v399_v28 }
 0x162   : > { %v402_v30 = vrot.slane %v401_v2, 1 }
 0x164   : > { %v403_v31 = vadd.f32 %v402_v30, %v401_v2 }
 0x166   : > { %530 = vpush %v403_v31 }
 0x197   : > { %s531_s18 = spop %530 }
 0x198   : > { %v406_v5 = vstv %s531_s18 }
 0x199   : > { %v407_v7 = vsel %vm405_vm5, %v406_v5, 0.0 }
 0x19a   : > { %408 = vst [vmem:[%s225_s10] sm:$0x1] %v407_v7 }
 0x19b   : > { %644 = shalt.err (!%p641_p5)
}
 0x19c   : > { %s645_s24 = scalar_lea.hbm %s880_s23, 16  ;;  %s649_s6 = scalar_lea.hbm %s925_s3, 32 }
 0x19d   : > { %p646_p6 = scmp.ne.s32.totalorder %s880_s23, %s645_s24  ;;  %p650_p4 = scmp.lt.s32.totalorder %s880_s23, %s925_s3 }
 0x19e   : > { %p651_p13 = scmp.lt.s32.totalorder %s649_s6, %s645_s24 }
 0x19f   : > { %p647_p7 = pnand %p646_p6, %p790_p9 }
 0x1a0   : > { %p652_p8 = por %p651_p13, %p650_p4 }
 0x1a1   : > { %p648_p10 = pneg %p647_p7 }
 0x1a3   : > { %p653_p11 = pnand %p652_p8, %p648_p10 }
 0x1a5   : > { %656 = shalt.err (!%p653_p11)
}
 0x1a6   : > { %534 = dma.vmem_to_hbm [thread:$0]  (%p790_p9), %s423_s11, 16, %s880_s23, %s410_s28  }
 0x1a7 PF: > { %s434_s9 = sand.u32 1, %s691_s12   ;;  %p933_p12 = scmp.ne.s32.totalorder %s929_s27, 0 }
 0x1a8   : > { %p934_p0 = scmp.ge.s32.totalorder %s711_s17, 2  ;;  %s435_s10 = scalar_lea.sflag [#allocation5], %s434_s9 }
 0x1aa   : > { %p541_p1 = pnand %p934_p0, %p933_p12 }
 0x1ac   : > { %p542_p2 = pneg %p541_p1 }
 0x1ae   : > { %686 = dma.done.wait (%p542_p2), %s435_s10, 16  }
 0x1af   : > { %688 = vsyncadd (%p542_p2), %s435_s10, 4294967280  ;;  %s19_s17 = sadd.s32 1, %s711_s17   ;;  %s935_s12 = smov %s695_s13 }
 0x1b0   : > { %p16_p3 = scmp.ge.s32.totalorder %s19_s17, 4   ;;  %s936_s13 = smov %s699_s14 }
 0x1b1   : > { %s937_s14 = smov %s795_s26  ;;  %s938_s15 = smov %s707_s16 }
 0x1b2   : > { %s939_s16 = smov %s941_s20  ;;  %18 = sbr.rel (!%p16_p3) target bundleno = 6 (0x6), region = 88 }
 0x1b7   :  { %439 = vsyncpa [#allocation4], 1 }
 0x1b8   :  { %441 = vsyncpa [#allocation4 + $0x1], 1 }
 0x1b9   :  { %442 = vsyncpa [#allocation5], 1 }
 0x1ba   :  { %444 = vsyncpa [#allocation5 + $0x1], 1 }

</bundles_post_ra>
